<compile_context>
chip_gen: v7x
topology: tpu7x:2x2x1
jax: 0.10.0
libtpu: 0.0.40
codegen_flags: <defaults>
</compile_context>

<pallas_src>
import functools

import jax
import jax.numpy as jnp
from jax.experimental import pallas as pl
from jax.experimental.pallas import tpu as pltpu


def _dc_kernel(pred_ref, k0_ref, mask_ref, out_ref, *, noise_lvl):
    """Elementwise data-consistency on one lane-dense VMEM tile."""
    pred = pred_ref[...]
    k0 = k0_ref[...]
    m = mask_ref[...].astype(pred.dtype)          # bf16 {0,1} -> exact in f32
    if noise_lvl:
        v = float(noise_lvl)
        inv = 1.0 / (1.0 + v)                     # hoisted: multiply, no divide
        blended = (pred + v * k0) * inv
        out_ref[...] = pred + m * (blended - pred)   # == (1-m)*pred + m*blended
    else:
        out_ref[...] = pred + m * (k0 - pred)        # == (1-m)*pred + m*k0


def _vmem_capacity_bytes():
    """Physical VMEM of the local chip; conservative fallback if query fails."""
    try:
        return int(pltpu.get_tpu_info().vmem_capacity_bytes)
    except Exception:
        return 64 * 1024 * 1024      # v7x physical VMEM (safe on every generation)


def _choose_layout(n_elems, itemsize, vmem_capacity):
    """Pick a canonical (rows, lane) slab + row-tile for an elementwise stream.

    lane is a multiple of 128 (unmasked vst); the row tile targets a per-array
    block of ~1-8 MiB so the kernel is DMA-pipeline-bound, not grid-overhead-bound.
    """
    lane = None
    # Prefer a lane width that also leaves rows divisible by 8 (clean sublane tiling).
    for w in (8192, 4096, 2048, 1024, 512, 256, 128):
        if n_elems % (w * 8) == 0:
            lane = w
            break
    if lane is None:
        for w in (8192, 4096, 2048, 1024, 512, 256, 128):
            if n_elems % w == 0:
                lane = w
                break
    if lane is None:
        lane = n_elems               # degenerate odd size: single full-extent row
    rows = n_elems // lane

    # Per-array block budget: 4 arrays x 2 pipeline buffers must stay well under
    # the scoped VMEM limit -> capacity/16, clamped to [512 KiB, 8 MiB].
    per_block_budget = min(max(vmem_capacity // 16, 512 * 1024), 8 * 1024 * 1024)
    max_rows = max(16, per_block_budget // (lane * itemsize))

    if rows <= 8:
        tile_rows = rows             # full extent: always legal
    else:
        tile_rows = None
        for step in (16, 8):         # 16 keeps the bf16 mask on its native tile too
            if rows % step == 0:
                best = step
                r = step
                while r <= min(rows, max_rows):
                    if rows % r == 0:
                        best = r
                    r += step
                tile_rows = best
                break
        if tile_rows is None:
            tile_rows = rows         # full extent fallback
    return rows, lane, tile_rows


@functools.partial(jax.jit, static_argnames=("noise_lvl", "donate_prediction"))
def data_consistency_in_kspace(prediction, k0, mask, noise_lvl=None,
                               donate_prediction=False):
    """
    prediction : (B, nspatial, 2)   k-space prediction
    k0         : (B, 2, nx, ny)     sampled k-space (NCHW-like)
    mask       : (B, 2, nx, ny)     binary sampling mask
    returns    : (B, nspatial, 2)
    """
    B, nspatial, dim = prediction.shape
    assert dim == 2
    n_elems = B * nspatial * dim
    itemsize = jnp.dtype(prediction.dtype).itemsize
    mask_dtype = jnp.bfloat16        # mask is binary -> bf16 is exact, halves its stream

    vmem_cap = _vmem_capacity_bytes()
    rows, lane, tile_rows = _choose_layout(n_elems, itemsize, vmem_cap)

    # PyTorch glue: permute(0, 2, 3, 1) + view(B, -1, 2); then everything is flattened
    # to the canonical (rows, lane) slab (a pure reshape: row-major order of the
    # permuted k0/mask matches prediction's (B, nspatial, 2) element order).
    # TODO(synk): for cascaded reconstructions hoist these two transposes out of the
    # cascade (k0/mask are constant across DC layers), or fold the NCHW->NHWC channel
    # interleave into the kernel on the XLU once a reliable Mosaic lowering exists;
    # un-hoisted they roughly double HBM traffic for this bandwidth-bound op.
    pred_f = prediction.reshape(rows, lane)
    k0_f = jnp.transpose(k0, (0, 2, 3, 1)).astype(prediction.dtype).reshape(rows, lane)
    mask_f = jnp.transpose(mask, (0, 2, 3, 1)).astype(mask_dtype).reshape(rows, lane)

    # VMEM budget: double-buffered pred/k0/out (f32) + mask (bf16) blocks, 2x headroom,
    # capped at 90% of physical VMEM (fits by construction: working set < 0.5*capacity).
    blk_main = tile_rows * lane * itemsize
    blk_mask = tile_rows * lane * jnp.dtype(mask_dtype).itemsize
    working = 2 * (3 * blk_main + blk_mask)
    vmem_limit = int(min(max(2 * working, 16 * 1024 * 1024), int(0.9 * vmem_cap)))

    grid = (rows // tile_rows,)
    spec = pl.BlockSpec((tile_rows, lane), lambda i: (i, 0))

    cost = pl.CostEstimate(
        flops=(6 if noise_lvl else 3) * n_elems,
        transcendentals=0,
        bytes_accessed=n_elems * (3 * itemsize + jnp.dtype(mask_dtype).itemsize),
    )

    out_f = pl.pallas_call(
        functools.partial(_dc_kernel, noise_lvl=noise_lvl),
        out_shape=jax.ShapeDtypeStruct((rows, lane), prediction.dtype),
        grid=grid,
        in_specs=[spec, spec, spec],
        out_specs=spec,
        input_output_aliases=({0: 0} if donate_prediction else {}),
        compiler_params=pltpu.CompilerParams(
            dimension_semantics=("parallel",),
            vmem_limit_bytes=vmem_limit,
        ),
        cost_estimate=cost,
    )(pred_f, k0_f, mask_f)

    return out_f.reshape(B, nspatial, dim)


if __name__ == "__main__":
    key = jax.random.PRNGKey(0)
    k_pred, k_k0, k_mask = jax.random.split(key, 3)

    # Small, non-square spatial shape.
    B, nx, ny, dim = 2, 32, 48, 2
    nspatial = nx * ny

    prediction = jax.random.normal(k_pred, (B, nspatial, dim), dtype=jnp.float32)
    k0 = jax.random.normal(k_k0, (B, dim, nx, ny), dtype=jnp.float32)
    mask = (jax.random.uniform(k_mask, (B, dim, nx, ny)) > 0.5).astype(jnp.float32)

    # Reference (plain JAX), mirroring the PyTorch permute + view.
    k0_r = jnp.transpose(k0, (0, 2, 3, 1)).reshape(B, -1, 2)
    mask_r = jnp.transpose(mask, (0, 2, 3, 1)).reshape(B, -1, 2)

    # noise_lvl=None case (matches DataConsistencyInKspace()).
    out = data_consistency_in_kspace(prediction, k0, mask)
    out = jax.block_until_ready(out)
    ref = (1.0 - mask_r) * prediction + mask_r * k0_r
    assert out.shape == prediction.shape
    assert jnp.allclose(out, ref, atol=1e-6), "mismatch vs reference (no noise)"

    # noise_lvl set case.
    v = 0.1
    out_n = data_consistency_in_kspace(prediction, k0, mask, noise_lvl=v)
    out_n = jax.block_until_ready(out_n)
    ref_n = (1.0 - mask_r) * prediction + mask_r * (prediction + v * k0_r) / (1.0 + v)
    assert jnp.allclose(out_n, ref_n, atol=1e-5), "mismatch vs reference (noise)"

    # Donated-prediction path (output aliases the prediction slab in VMEM/HBM).
    out_d = data_consistency_in_kspace(prediction, k0, mask, donate_prediction=True)
    out_d = jax.block_until_ready(out_d)
    assert jnp.allclose(out_d, ref, atol=1e-6), "mismatch vs reference (donated)"

    print("KERNEL_OK")
</pallas_src>

<mosaic_0001>
module attributes {stable_mosaic.version = 11 : i64} {
  func.func @_dc_kernel(%arg0: i32, %arg1: memref<24x256xf32, #tpu.memory_space<vmem>>, %arg2: memref<24x256xf32, #tpu.memory_space<vmem>>, %arg3: memref<24x256xbf16, #tpu.memory_space<vmem>>, %arg4: memref<24x256xf32, #tpu.memory_space<vmem>>) attributes {dimension_semantics = [#tpu.dimension_semantics<parallel>], iteration_bounds = array<i64: 1>, scalar_prefetch = 0 : i64, scratch_operands = 0 : i64, tpu.core_type = #tpu.core_type<tc>, window_params = [{transform_indices = @transform_0, window_bounds = array<i64: 24, 256>}, {transform_indices = @transform_1, window_bounds = array<i64: 24, 256>}, {transform_indices = @transform_2, window_bounds = array<i64: 24, 256>}, {transform_indices = @transform_3, window_bounds = array<i64: 24, 256>}]} {
    %c0 = arith.constant 0 : index
    %c0_0 = arith.constant 0 : index
    %0 = vector.load %arg1[%c0, %c0_0] : memref<24x256xf32, #tpu.memory_space<vmem>>, vector<24x256xf32>
    %c0_1 = arith.constant 0 : index
    %c0_2 = arith.constant 0 : index
    %1 = vector.load %arg2[%c0_1, %c0_2] : memref<24x256xf32, #tpu.memory_space<vmem>>, vector<24x256xf32>
    %c0_3 = arith.constant 0 : index
    %c0_4 = arith.constant 0 : index
    %2 = vector.load %arg3[%c0_3, %c0_4] : memref<24x256xbf16, #tpu.memory_space<vmem>>, vector<24x256xbf16>
    %3 = arith.extf %2 : vector<24x256xbf16> to vector<24x256xf32>
    %4 = arith.subf %1, %0 : vector<24x256xf32>
    %5 = arith.mulf %3, %4 : vector<24x256xf32>
    %6 = arith.addf %0, %5 : vector<24x256xf32>
    %c0_5 = arith.constant 0 : index
    %c0_6 = arith.constant 0 : index
    %7 = vector.load %arg4[%c0_5, %c0_6] : memref<24x256xf32, #tpu.memory_space<vmem>>, vector<24x256xf32>
    tpu.vector_store %arg4[%c0_5, %c0_6], %6 {strides = array<i32>} : memref<24x256xf32, #tpu.memory_space<vmem>>, vector<24x256xf32>,
    return
  }
  func.func @transform_0(%arg0: i32) -> (i32, i32) {
    %c0_i32 = arith.constant 0 : i32
    %c0_i32_0 = arith.constant 0 : i32
    return %arg0, %c0_i32 : i32, i32
  }
  func.func @transform_1(%arg0: i32) -> (i32, i32) {
    %c0_i32 = arith.constant 0 : i32
    %c0_i32_0 = arith.constant 0 : i32
    return %arg0, %c0_i32 : i32, i32
  }
  func.func @transform_2(%arg0: i32) -> (i32, i32) {
    %c0_i32 = arith.constant 0 : i32
    %c0_i32_0 = arith.constant 0 : i32
    return %arg0, %c0_i32 : i32, i32
  }
  func.func @transform_3(%arg0: i32) -> (i32, i32) {
    %c0_i32 = arith.constant 0 : i32
    %c0_i32_0 = arith.constant 0 : i32
    return %arg0, %c0_i32 : i32, i32
  }
}

</mosaic_0001>

<bundles_post_ra>
// kernel: data_consistency_in_kspace.1
= control target key start
LH: loop header
LB: loop body
LE: loop exit
PB: predicated region body
PF: predicated region fallthrough
CT: control target
= control target key end

     0   :  { %s146_s0 = inlined_call_operand.vmem [shape: f32[24,256], index: 0, kind: input, shape index: {}]   ;;  %s147_s1 = inlined_call_operand.vmem [shape: f32[24,256], index: 1, kind: input, shape index: {}]   ;;  %s148_s2 = inlined_call_operand.vmem [shape: bf16[24,256], index: 2, kind: input, shape index: {}]   ;;  %s149_s3 = inlined_call_operand.vmem [shape: f32[24,256], index: 3, kind: output, shape index: {}]  }
   0x1   :  { %v14_v0 = vld [vmem:[%s146_s0] sm:$0xff]  ;;  %v15_v5 = vld [vmem:[%s146_s0 + $0x8] sm:$0xff]  ;;  %v16_v8 = vld [vmem:[%s146_s0 + $0x10] sm:$0xff] }
   0x2   :  { %v20_v1 = vld [vmem:[%s147_s1] sm:$0xff]  ;;  %v21_v6 = vld [vmem:[%s147_s1 + $0x8] sm:$0xff]  ;;  %v22_v10 = vld [vmem:[%s147_s1 + $0x10] sm:$0xff] }
   0x3   :  { %v26_v2 = vld [vmem:[%s148_s2] sm:$0xff]  ;;  %v35_v4 = vsub.f32 %v20_v1, %v14_v0  ;;  %v36_v9 = vsub.f32 %v21_v6, %v15_v5  ;;  %v27_v11 = vld [vmem:[%s148_s2 + $0x8] sm:$0xff]  ;;  %v17_v12 = vld [vmem:[%s146_s0 + $0x18] sm:$0xff]  ;;  %v37_v15 = vsub.f32 %v22_v10, %v16_v8 }
   0x4   :  { %v29_v3 = vunpack.c.l.bf16 %v26_v2  ;;  %v30_v7 = vunpack.c.h.bf16 %v26_v2  ;;  %v31_v14 = vunpack.c.l.bf16 %v27_v11  ;;  %v23_v16 = vld [vmem:[%s147_s1 + $0x18] sm:$0xff]  ;;  %v32_v17 = vunpack.c.h.bf16 %v27_v11  ;;  %v18_v18 = vld [vmem:[%s146_s0 + $0x20] sm:$0xff]  ;;  %v28_v22 = vld [vmem:[%s148_s2 + $0x10] sm:$0xff] }
   0x5   :  { %v24_v19 = vld [vmem:[%s147_s1 + $0x20] sm:$0xff]  ;;  %v38_v21 = vsub.f32 %v23_v16, %v17_v12  ;;  %v19_v24 = vld [vmem:[%s146_s0 + $0x28] sm:$0xff]  ;;  %v33_v28 = vunpack.c.l.bf16 %v28_v22  ;;  %v34_v29 = vunpack.c.h.bf16 %v28_v22 }
   0x6   :  { %v41_v13 = vmul.f32 %v35_v4, %v29_v3  ;;  %v42_v20 = vmul.f32 %v36_v9, %v30_v7  ;;  %v39_v23 = vsub.f32 %v24_v19, %v18_v18  ;;  %v25_v25 = vld [vmem:[%s147_s1 + $0x28] sm:$0xff]  ;;  %v43_v27 = vmul.f32 %v37_v15, %v31_v14 }
   0x7   :  { %v44_v31 = vmul.f32 %v38_v21, %v32_v17  ;;  %v40_v32 = vsub.f32 %v25_v25, %v19_v24 }
   0x8   :  { %v47_v26 = vadd.f32 %v41_v13, %v14_v0  ;;  %v48_v30 = vadd.f32 %v42_v20, %v15_v5  ;;  %v49_v33 = vadd.f32 %v43_v27, %v16_v8  ;;  %v45_v34 = vmul.f32 %v39_v23, %v33_v28 }
   0x9   :  { %v50_v35 = vadd.f32 %v44_v31, %v17_v12  ;;  %v46_v36 = vmul.f32 %v40_v32, %v34_v29 }
   0xa   :  { %53 = vst [vmem:[%s149_s3] sm:$0xff] %v47_v26  ;;  %54 = vst [vmem:[%s149_s3 + $0x8] sm:$0xff] %v48_v30  ;;  %v51_v37 = vadd.f32 %v45_v34, %v18_v18 }
   0xb   :  { %55 = vst [vmem:[%s149_s3 + $0x10] sm:$0xff] %v49_v33  ;;  %56 = vst [vmem:[%s149_s3 + $0x18] sm:$0xff] %v50_v35  ;;  %v52_v38 = vadd.f32 %v46_v36, %v19_v24 }
   0xc   :  { %57 = vst [vmem:[%s149_s3 + $0x20] sm:$0xff] %v51_v37 }
   0xd   :  { %58 = vst [vmem:[%s149_s3 + $0x28] sm:$0xff] %v52_v38 }

</bundles_post_ra>
